<compile_context>
chip_gen: v7x
topology: tpu7x:2x2x1
jax: 0.10.0
libtpu: 0.0.40
codegen_flags: <defaults>
</compile_context>

<pallas_src>
import jax
import jax.numpy as jnp
from jax.experimental import pallas as pl
from jax.experimental.pallas import tpu as pltpu


# Per-tile VMEM budget.  Pipeline holds ~2x (input) + 2x (output) of this plus the tiny
# per-row constant column, so ~2 MiB keeps total pipeline buffers <= ~8-9 MiB: safe under
# v5e's 16 MiB default scoped limit and comfortable on v7x's 64 MiB physical VMEM.
_TARGET_TILE_BYTES = 2 << 20


def _sublane(dtype):
    """Native sublane packing for the dtype: 8 (f32), 16 (bf16/f16), 32 (int8/fp8)."""
    return max(8, 32 // jnp.dtype(dtype).itemsize)


def _choose_blocks(num_rows, lane_len, itemsize, sublane, target_bytes=_TARGET_TILE_BYTES):
    """Pick (block_rows, lane_block) so the tile is <= ~target_bytes and TPU-tileable."""
    # Lane blocking: keep the full lane extent if a minimal (sublane-high) strip fits the
    # budget; otherwise block lanes in multiples of 128 (stores stay unmasked; a ragged
    # final block, if any, is handled by Pallas boundary masking).
    if lane_len * itemsize * sublane <= target_bytes:
        lane_block = lane_len
    else:
        max_lanes = target_bytes // (sublane * itemsize)
        lane_block = min(lane_len, max(128, (max_lanes // 128) * 128))

    # Row blocking: biggest sublane-multiple that keeps the tile under budget.
    max_rows = max(sublane, (target_bytes // (lane_block * itemsize)) // sublane * sublane)
    block_rows = min(num_rows, max_rows)
    if block_rows < num_rows:
        block_rows = max(sublane, (block_rows // sublane) * sublane)

    # v7x megacore: if everything fits in a single grid step, split rows so there are at
    # least 2 "parallel" programs to shard across the 2 TensorCores (no-op on v5e/v6e).
    n_programs = pl.cdiv(num_rows, block_rows) * pl.cdiv(lane_len, lane_block)
    if n_programs < 2 and num_rows >= 2 * sublane:
        half = (num_rows + 1) // 2
        block_rows = max(sublane, (half // sublane) * sublane)

    return block_rows, lane_block


def _normalize_kernel(params_ref, x_ref, o_ref):
    # params_ref: (block_rows, 2) f32 with [:, 0] = mean, [:, 1] = 1/std (per row).
    # x_ref/o_ref: (block_rows, lane_block) tiles.
    # One VALU sub + mul per element in f32 (reciprocal precomputed), cast on store.
    x = x_ref[...].astype(jnp.float32)
    mean_col = params_ref[:, 0:1]
    inv_std_col = params_ref[:, 1:2]
    o_ref[...] = ((x - mean_col) * inv_std_col).astype(o_ref.dtype)


def normalize_layer(x, mean, std):
    """x: (N, C, H, W); mean/std: (C,). Returns (x - mean[c]) / std[c], same shape/dtype."""
    N, C, H, W = x.shape
    assert mean.shape == (C,) and std.shape == (C,)
    R, L = N * C, H * W

    # Lane-dense 2-D view: row r corresponds to channel r % C.
    x2 = x.reshape(R, L)

    # Per-row constants kept in f32 (exact reciprocal; no bf16 rounding of constants),
    # packed into one (R, 2) array so each grid step issues a single tiny side DMA.
    mean_rows = jnp.tile(mean.astype(jnp.float32), N)
    inv_std_rows = jnp.tile(1.0 / std.astype(jnp.float32), N)
    params = jnp.stack([mean_rows, inv_std_rows], axis=-1)  # (R, 2) f32

    itemsize = jnp.dtype(x.dtype).itemsize
    sublane = _sublane(x.dtype)
    block_rows, lane_block = _choose_blocks(R, L, itemsize, sublane)
    grid = (pl.cdiv(R, block_rows), pl.cdiv(L, lane_block))

    out2 = pl.pallas_call(
        _normalize_kernel,
        out_shape=jax.ShapeDtypeStruct((R, L), x.dtype),
        grid=grid,
        in_specs=[
            pl.BlockSpec((block_rows, 2), lambda i, j: (i, 0)),
            pl.BlockSpec((block_rows, lane_block), lambda i, j: (i, j)),
        ],
        out_specs=pl.BlockSpec((block_rows, lane_block), lambda i, j: (i, j)),
        compiler_params=pltpu.CompilerParams(
            dimension_semantics=("parallel", "parallel")),
    )(params, x2)

    return out2.reshape(N, C, H, W)


if __name__ == "__main__":
    key = jax.random.PRNGKey(0)
    N, C, H, W = 2, 4, 16, 16

    # Deterministic parameters (module __init__ takes per-channel mean/std lists).
    mean = jnp.array([0.4914, 0.4822, 0.4465, 0.5000], dtype=jnp.float32)
    std = jnp.array([0.2470, 0.2435, 0.2616, 0.2500], dtype=jnp.float32)

    x = jax.random.uniform(key, (N, C, H, W), dtype=jnp.float32)

    out = normalize_layer(x, mean, std)
    out = jax.block_until_ready(out)

    # Reference: plain-JAX broadcasted semantics (matches PyTorch NCHW broadcast).
    ref = (x - mean[None, :, None, None]) / std[None, :, None, None]
    assert out.shape == x.shape and out.dtype == x.dtype
    assert jnp.allclose(out, ref, atol=1e-6, rtol=1e-6)

    print("KERNEL_OK")
</pallas_src>

<mosaic_0001>
module attributes {stable_mosaic.version = 11 : i64} {
  func.func @_normalize_kernel(%arg0: i32, %arg1: i32, %arg2: memref<8x2xf32, #tpu.memory_space<vmem>>, %arg3: memref<8x256xf32, #tpu.memory_space<vmem>>, %arg4: memref<8x256xf32, #tpu.memory_space<vmem>>) attributes {dimension_semantics = [#tpu.dimension_semantics<parallel>, #tpu.dimension_semantics<parallel>], iteration_bounds = array<i64: 1, 1>, scalar_prefetch = 0 : i64, scratch_operands = 0 : i64, tpu.core_type = #tpu.core_type<tc>, window_params = [{transform_indices = @transform_0, window_bounds = array<i64: 8, 2>}, {transform_indices = @transform_1, window_bounds = array<i64: 8, 256>}, {transform_indices = @transform_2, window_bounds = array<i64: 8, 256>}]} {
    %c0 = arith.constant 0 : index
    %c0_0 = arith.constant 0 : index
    %0 = vector.load %arg3[%c0, %c0_0] : memref<8x256xf32, #tpu.memory_space<vmem>>, vector<8x256xf32>
    %c0_1 = arith.constant 0 : index
    %c0_2 = arith.constant 0 : index
    %1 = vector.load %arg2[%c0_1, %c0_2] : memref<8x2xf32, #tpu.memory_space<vmem>>, vector<8x1xf32>
    %c0_3 = arith.constant 0 : index
    %c1 = arith.constant 1 : index
    %2 = vector.load %arg2[%c0_3, %c1] : memref<8x2xf32, #tpu.memory_space<vmem>>, vector<8x1xf32>
    %3 = vector.broadcast %1 : vector<8x1xf32> to vector<8x256xf32>
    %4 = arith.subf %0, %3 : vector<8x256xf32>
    %5 = vector.broadcast %2 : vector<8x1xf32> to vector<8x256xf32>
    %6 = arith.mulf %4, %5 : vector<8x256xf32>
    %c0_4 = arith.constant 0 : index
    %c0_5 = arith.constant 0 : index
    %7 = vector.load %arg4[%c0_4, %c0_5] : memref<8x256xf32, #tpu.memory_space<vmem>>, vector<8x256xf32>
    tpu.vector_store %arg4[%c0_4, %c0_5], %6 {strides = array<i32>} : memref<8x256xf32, #tpu.memory_space<vmem>>, vector<8x256xf32>,
    return
  }
  func.func @transform_0(%arg0: i32, %arg1: i32) -> (i32, i32) {
    %c0_i32 = arith.constant 0 : i32
    %c0_i32_0 = arith.constant 0 : i32
    return %arg0, %c0_i32 : i32, i32
  }
  func.func @transform_1(%arg0: i32, %arg1: i32) -> (i32, i32) {
    %c0_i32 = arith.constant 0 : i32
    return %arg0, %arg1 : i32, i32
  }
  func.func @transform_2(%arg0: i32, %arg1: i32) -> (i32, i32) {
    %c0_i32 = arith.constant 0 : i32
    return %arg0, %arg1 : i32, i32
  }
}

</mosaic_0001>

<bundles_post_ra>
// kernel: tpu_custom_call.1
= control target key start
LH: loop header
LB: loop body
LE: loop exit
PB: predicated region body
PF: predicated region fallthrough
CT: control target
= control target key end

     0   :  { %7 = vsyncpa [#allocation3], 0  ;;  %s157_s0 = inlined_call_operand.vmem [shape: f32[8,2], index: 0, kind: input, shape index: {}]   ;;  %s158_s1 = inlined_call_operand.hbm [shape: f32[8,256], index: 1, kind: input, shape index: {}]   ;;  %s159_s2 = inlined_call_operand.hbm [shape: f32[8,256], index: 2, kind: output, shape index: {}]  }
   0x1   :  { %8 = vsyncpa [#allocation4], 0  ;;  %s111_s9 = smov [#allocation2]   ;;  %s63_s13 = scalar_lea.hbm %s158_s1, 256 }
   0x2   :  { %s17_s10 = sshll.u32 %s111_s9, 4  ;;  %p64_p0 = scmp.ne.s32.totalorder %s158_s1, %s63_s13  ;;  %s18_s10 = int_to_ptr.vmem [resolvable:$true] %s17_s10 }
   0x3   :  { %p67_p1 = scmp.lt.u32.totalorder %s63_s13, %s158_s1 }
   0x5   :  { %p69_p2 = pnand %p67_p1, %p64_p0 }
   0x7   :  { %72 = shalt.err (!%p69_p2)
}
   0x8   :  { %s73_s18 = scalar_lea.vmem %s18_s10, 256  ;;  %p78_p4 = scmp.lt.s32.totalorder %s18_s10, %s18_s10 }
   0x9   :  { %p74_p3 = scmp.ne.s32.totalorder %s18_s10, %s73_s18  ;;  %p79_p5 = scmp.lt.s32.totalorder %s73_s18, %s73_s18 }
   0xb   :  { %p80_p6 = por %p79_p5, %p78_p4 }
   0xd   :  { %p81_p7 = pnand %p80_p6, %p74_p3 }
   0xf   :  { %84 = shalt.err (!%p81_p7)
}
  0x10   :  { %20 = dma.hbm_to_vmem [thread:$0]  %s158_s1, 256, %s18_s10, [#allocation3]  }
  0x11   :  { %107 = dma.done.wait [#allocation3], 256  }
  0x12   :  { %108 = vsyncadd [#allocation3], 4294967040  ;;  %v112_v0 = vmov 0   ;;  %v26_v1 = vld [vmem:[%s157_s0] sm:$0xff]  ;;  %v113_v2 = vmov 1   ;;  %v25_v5 = vld [vmem:[#allocation2 + $0x8] sm:$0xff] }
  0x13   :  { %61 = vset.pattern.permute.xlu0 %v112_v0  ;;  %v24_v4 = vld [vmem:[#allocation2] sm:$0xff]  ;;  %s114_s23 = smov [#allocation5]  }
  0x14   :  { %29 = vperm.xlu0 %61, %v26_v1   ;;  %s48_s24 = sshll.u32 %s114_s23, 4  ;;  %s49_s24 = int_to_ptr.vmem [resolvable:$true] %s48_s24 }
  0x15   :  { %s85_s1 = scalar_lea.vmem %s49_s24, 256  ;;  %p90_p9 = scmp.lt.s32.totalorder %s49_s24, %s49_s24 }
  0x16   :  { %p86_p8 = scmp.ne.s32.totalorder %s49_s24, %s85_s1  ;;  %p91_p10 = scmp.lt.s32.totalorder %s85_s1, %s85_s1 }
  0x18   :  { %62 = vset.pattern.permute.xlu0 %v113_v2  ;;  %p92_p11 = por %p91_p10, %p90_p9 }
  0x19   :  { %35 = vperm.xlu0 %62, %v26_v1  }
  0x1a   :  { %p93_p12 = pnand %p92_p11, %p86_p8 }
  0x93   :  { %v30_v3 = vpop.permute.xlu0 %29 }
  0x94   :  { %v32_v6 = vsub.f32 %v24_v4, %v30_v3  ;;  %v33_v7 = vsub.f32 %v25_v5, %v30_v3 }
  0x98   :  { %v36_v8 = vpop.permute.xlu0 %35 }
  0x99   :  { %v38_v9 = vmul.f32 %v36_v8, %v32_v6  ;;  %v39_v10 = vmul.f32 %v36_v8, %v33_v7 }
  0x9b   :  { %40 = vst [vmem:[#allocation5] sm:$0xff] %v38_v9  ;;  %41 = vst [vmem:[#allocation5 + $0x8] sm:$0xff] %v39_v10 }
  0x9c   :  { %96 = shalt.err (!%p93_p12)
}
  0x9d   :  { %s97_s26 = scalar_lea.hbm %s159_s2, 256 }
  0x9e   :  { %p98_p13 = scmp.ne.s32.totalorder %s159_s2, %s97_s26  ;;  %p101_p0 = scmp.lt.u32.totalorder %s97_s26, %s159_s2 }
  0xa0   :  { %p103_p1 = pnand %p101_p0, %p98_p13 }
  0xa2   :  { %106 = shalt.err (!%p103_p1)
}
  0xa3   :  { %51 = dma.vmem_to_hbm [thread:$0]  %s49_s24, 256, %s159_s2, [#allocation4]  }
  0xa4   :  { %109 = dma.done.wait [#allocation4], 256  }
  0xa5   :  { %110 = vsyncadd [#allocation4], 4294967040 }
  0xa6   :  { %55 = vsyncpa [#allocation3], 1 }
  0xa7   :  { %56 = vsyncpa [#allocation4], 1 }

</bundles_post_ra>
